<compile_context>
chip_gen: v7x
topology: tpu7x:2x2x1
jax: 0.10.0
libtpu: 0.0.40
codegen_flags: <defaults>
</compile_context>

<pallas_src>
import jax
import jax.numpy as jnp
from jax.experimental import pallas as pl
from jax.experimental.pallas import tpu as pltpu


def nnreg_kernel(x_ref, w0_ref, b0_ref, w1_ref, b1_ref, w2_ref, b2_ref, o_ref):
    # X streamed from HBM as f32; cast to the matmul dtype in-kernel (VPU).
    x = x_ref[...].astype(w0_ref.dtype)                   # (TILE_B, nFeat)

    # dense0 + ReLU  (MXU matmul, f32 accumulation; bias/ReLU in f32 on VPU)
    h0 = jnp.dot(x, w0_ref[...], preferred_element_type=jnp.float32)
    h0 = jnp.maximum(h0 + b0_ref[...], 0.0)               # (TILE_B, nHid1)

    # TODO(synk): nn.Dropout is identity at inference; training-mode PRNG
    # masking (pltpu.prng_random_bits) intentionally omitted.

    # dense1 + ReLU
    h1 = jnp.dot(h0.astype(w1_ref.dtype), w1_ref[...],
                 preferred_element_type=jnp.float32)
    h1 = jnp.maximum(h1 + b1_ref[...], 0.0)               # (TILE_B, nHid2)

    # output layer: K=10, N=1 -> VPU multiply + XLU lane-reduce (an MXU pass
    # would be >99% padding).  b2 is an SMEM scalar.  The result is written
    # lane-dense as a (1, TILE_B) row -> unmasked dense stores + contiguous
    # writeback DMA.
    y = jnp.sum(h1 * w2_ref[...], axis=-1) + b2_ref[0]    # (TILE_B,)
    o_ref[...] = y[None, :].astype(o_ref.dtype)           # (1, TILE_B)


def _round_up(v, m):
    return ((v + m - 1) // m) * m


def _choose_tile(batch, tile_b):
    """Pick a batch tile: 128-multiple, capped for v7x VMEM, >=2 steps when possible."""
    # Cap ~8192: double-buffered f32 X tile (2x1 MiB at nFeat=32) plus the
    # lane-padded (128-lane) f32 h0/h1 temps (~4 MiB each) stays ~12-16 MiB,
    # inside the 32 MiB default scoped VMEM even on v7x (64 MiB physical).
    tile_b = max(128, min(int(tile_b), 8192))
    if batch <= 256:
        # Too small to split into two 128-multiple output blocks; a single
        # block equal to the full dims satisfies the (8,128) tiling rule.
        return batch
    # Aim for >= 2 grid steps so dimension_semantics=("parallel",) actually
    # feeds both v7x TensorCores (no-op on single-TC v5e/v6e).
    return min(tile_b, _round_up(pl.cdiv(batch, 2), 128))


def nnreg_forward(x, w0, b0, w1, b1, w2, b2, *, tile_b=8192, use_bf16=True):
    """x: (B, nFeat) f32.  w*: (in, out), b*: (1, out) as from init_params."""
    B, n_feat = x.shape
    n_hid1 = w0.shape[1]
    n_hid2 = w1.shape[1]
    assert w0.shape == (n_feat, n_hid1) and b0.shape == (1, n_hid1)
    assert w1.shape == (n_hid1, n_hid2) and b1.shape == (1, n_hid2)
    assert w2.shape == (n_hid2, 1) and b2.shape == (1, 1)

    TILE_B = _choose_tile(B, tile_b)
    grid = (pl.cdiv(B, TILE_B),)

    mm_dtype = jnp.bfloat16 if use_bf16 else jnp.float32
    # Only the tiny resident weights are pre-cast; X is streamed as f32 and
    # cast in-kernel (no separate XLA cast pass over the large operand).
    w0_in = w0.astype(mm_dtype)
    w1_in = w1.astype(mm_dtype)
    b0_in = b0.astype(jnp.float32)
    b1_in = b1.astype(jnp.float32)
    w2_row = w2.reshape(1, n_hid2).astype(jnp.float32)     # VPU projection, f32
    b2_s = b2.reshape(1).astype(jnp.float32)               # 1-D SMEM scalar

    def resident(shape):
        # Weights/biases stay VMEM-resident across all grid steps.
        return pl.BlockSpec(shape, lambda i: (0,) * len(shape))

    out_row = pl.pallas_call(
        nnreg_kernel,
        out_shape=jax.ShapeDtypeStruct((1, B), jnp.float32),   # lane-dense slab
        grid=grid,
        in_specs=[
            pl.BlockSpec((TILE_B, n_feat), lambda i: (i, 0)),   # X: streamed f32
            resident(w0_in.shape), resident(b0_in.shape),
            resident(w1_in.shape), resident(b1_in.shape),
            resident(w2_row.shape),
            pl.BlockSpec(memory_space=pltpu.MemorySpace.SMEM),  # b2 scalar
        ],
        out_specs=pl.BlockSpec((1, TILE_B), lambda i: (0, i)),
        compiler_params=pltpu.CompilerParams(
            dimension_semantics=("parallel",),   # shard batch across TCs (v7x)
        ),
    )(x.astype(jnp.float32), w0_in, b0_in, w1_in, b1_in, w2_row, b2_s)

    return out_row.reshape(B, 1)


def init_params(key, n_feat, n_hid1=20, n_hid2=10):
    """Deterministic init mirroring PyTorch nn.Linear default (U[-1/sqrt(fan_in), +])."""
    ks = jax.random.split(key, 6)

    def lin(kw, kb, fan_in, fan_out):
        bound = 1.0 / jnp.sqrt(fan_in)
        # stored as (in, out) so the kernel computes x @ W directly
        w = jax.random.uniform(kw, (fan_in, fan_out), jnp.float32, -bound, bound)
        b = jax.random.uniform(kb, (1, fan_out), jnp.float32, -bound, bound)
        return w, b

    w0, b0 = lin(ks[0], ks[1], n_feat, n_hid1)
    w1, b1 = lin(ks[2], ks[3], n_hid1, n_hid2)
    w2, b2 = lin(ks[4], ks[5], n_hid2, 1)
    return w0, b0, w1, b1, w2, b2


def nnreg_reference(x, w0, b0, w1, b1, w2, b2, use_bf16):
    """Plain-JAX reference; mimics the kernel's bf16 operand rounding if enabled."""
    if use_bf16:
        q = lambda a: a.astype(jnp.bfloat16).astype(jnp.float32)
    else:
        q = lambda a: a
    h0 = jnp.maximum(q(x) @ q(w0) + b0, 0.0)
    h1 = jnp.maximum(q(h0) @ q(w1) + b1, 0.0)
    return h1 @ w2 + b2


if __name__ == "__main__":
    key = jax.random.PRNGKey(0)
    k_x, k_p, k_big = jax.random.split(key, 3)

    batch, n_feat = 8, 32
    x = jax.random.normal(k_x, (batch, n_feat), jnp.float32)
    params = init_params(k_p, n_feat)

    # Exact-f32 path: tight check against plain-JAX reference.
    out_f32 = nnreg_forward(x, *params, use_bf16=False)
    jax.block_until_ready(out_f32)
    ref_f32 = nnreg_reference(x, *params, use_bf16=False)
    assert out_f32.shape == (batch, 1)
    assert jnp.allclose(out_f32, ref_f32, atol=1e-5, rtol=1e-5)

    # Default bf16-matmul path: looser tolerance (bf16 rounding of X/W/h0).
    out_bf16 = nnreg_forward(x, *params, use_bf16=True)
    jax.block_until_ready(out_bf16)
    ref_bf16 = nnreg_reference(x, *params, use_bf16=True)
    assert jnp.allclose(out_bf16, ref_bf16, atol=2e-2, rtol=2e-2)

    # Multi-tile grid with a partial trailing tile (exercises the pipelined
    # path, the lane-dense (1, TILE_B) output blocks, and the >=2-step split).
    x_big = jax.random.normal(k_big, (1000, n_feat), jnp.float32)
    out_big = nnreg_forward(x_big, *params, tile_b=256, use_bf16=True)
    jax.block_until_ready(out_big)
    ref_big = nnreg_reference(x_big, *params, use_bf16=True)
    assert out_big.shape == (1000, 1)
    assert jnp.allclose(out_big, ref_big, atol=2e-2, rtol=2e-2)

    print("KERNEL_OK")
</pallas_src>

<mosaic_0001>
module attributes {stable_mosaic.version = 11 : i64} {
  func.func @nnreg_kernel(%arg0: i32, %arg1: memref<8x32xf32, #tpu.memory_space<vmem>>, %arg2: memref<32x20xf32, #tpu.memory_space<vmem>>, %arg3: memref<1x20xf32, #tpu.memory_space<vmem>>, %arg4: memref<20x10xf32, #tpu.memory_space<vmem>>, %arg5: memref<1x10xf32, #tpu.memory_space<vmem>>, %arg6: memref<1x10xf32, #tpu.memory_space<vmem>>, %arg7: memref<1xf32, #tpu.memory_space<smem>>, %arg8: memref<1x8xf32, #tpu.memory_space<vmem>>) attributes {dimension_semantics = [#tpu.dimension_semantics<parallel>], iteration_bounds = array<i64: 1>, scalar_prefetch = 0 : i64, scratch_operands = 0 : i64, tpu.core_type = #tpu.core_type<tc>, window_params = [{transform_indices = @transform_0, window_bounds = array<i64: 8, 32>}, {pipeline_mode = #tpu.pipeline_mode<synchronous>, transform_indices = @transform_1, window_bounds = array<i64: 32, 20>}, {pipeline_mode = #tpu.pipeline_mode<synchronous>, transform_indices = @transform_2, window_bounds = array<i64: 1, 20>}, {pipeline_mode = #tpu.pipeline_mode<synchronous>, transform_indices = @transform_3, window_bounds = array<i64: 20, 10>}, {pipeline_mode = #tpu.pipeline_mode<synchronous>, transform_indices = @transform_4, window_bounds = array<i64: 1, 10>}, {pipeline_mode = #tpu.pipeline_mode<synchronous>, transform_indices = @transform_5, window_bounds = array<i64: 1, 10>}, {transform_indices = @transform_6, window_bounds = array<i64: 1>}, {transform_indices = @transform_7, window_bounds = array<i64: 1, 8>}]} {
    %c0 = arith.constant 0 : index
    %c0_0 = arith.constant 0 : index
    %0 = vector.load %arg1[%c0, %c0_0] : memref<8x32xf32, #tpu.memory_space<vmem>>, vector<8x32xf32>
    %c0_1 = arith.constant 0 : index
    %c0_2 = arith.constant 0 : index
    %1 = vector.load %arg2[%c0_1, %c0_2] : memref<32x20xf32, #tpu.memory_space<vmem>>, vector<32x20xf32>
    %cst = arith.constant dense<0.000000e+00> : vector<8x20xf32>
    %2 = tpu.matmul %0, %1, %cst {dimension_numbers = #tpu.dot_dimension_numbers<[1], [0], [0], [1], [0, 0, 1, 1], [], []>} : vector<8x32xf32>, vector<32x20xf32>, vector<8x20xf32> -> vector<8x20xf32>
    %c0_3 = arith.constant 0 : index
    %c0_4 = arith.constant 0 : index
    %3 = vector.load %arg3[%c0_3, %c0_4] : memref<1x20xf32, #tpu.memory_space<vmem>>, vector<1x20xf32>
    %4 = vector.broadcast %3 : vector<1x20xf32> to vector<8x20xf32>
    %5 = arith.addf %2, %4 : vector<8x20xf32>
    %cst_5 = arith.constant 0.000000e+00 : f32
    %6 = vector.broadcast %cst_5 : f32 to vector<8x20xf32>
    %7 = arith.maximumf %5, %6 : vector<8x20xf32>
    %c0_6 = arith.constant 0 : index
    %c0_7 = arith.constant 0 : index
    %8 = vector.load %arg4[%c0_6, %c0_7] : memref<20x10xf32, #tpu.memory_space<vmem>>, vector<20x10xf32>
    %cst_8 = arith.constant dense<0.000000e+00> : vector<8x10xf32>
    %9 = tpu.matmul %7, %8, %cst_8 {dimension_numbers = #tpu.dot_dimension_numbers<[1], [0], [0], [1], [0, 0, 1, 1], [], []>} : vector<8x20xf32>, vector<20x10xf32>, vector<8x10xf32> -> vector<8x10xf32>
    %c0_9 = arith.constant 0 : index
    %c0_10 = arith.constant 0 : index
    %10 = vector.load %arg5[%c0_9, %c0_10] : memref<1x10xf32, #tpu.memory_space<vmem>>, vector<1x10xf32>
    %11 = vector.broadcast %10 : vector<1x10xf32> to vector<8x10xf32>
    %12 = arith.addf %9, %11 : vector<8x10xf32>
    %cst_11 = arith.constant 0.000000e+00 : f32
    %13 = vector.broadcast %cst_11 : f32 to vector<8x10xf32>
    %14 = arith.maximumf %12, %13 : vector<8x10xf32>
    %c0_12 = arith.constant 0 : index
    %c0_13 = arith.constant 0 : index
    %15 = vector.load %arg6[%c0_12, %c0_13] : memref<1x10xf32, #tpu.memory_space<vmem>>, vector<1x10xf32>
    %16 = vector.broadcast %15 : vector<1x10xf32> to vector<8x10xf32>
    %17 = arith.mulf %14, %16 : vector<8x10xf32>
    %cst_14 = arith.constant dense<0.000000e+00> : vector<8xf32>
    %18 = vector.multi_reduction <add>, %17, %cst_14 [1] : vector<8x10xf32> to vector<8xf32>
    %c0_15 = arith.constant 0 : index
    %19 = memref.load %arg7[%c0_15] : memref<1xf32, #tpu.memory_space<smem>>
    %20 = vector.broadcast %19 : f32 to vector<8xf32>
    %21 = arith.addf %18, %20 : vector<8xf32>
    %22 = vector.shape_cast %21 : vector<8xf32> to vector<1x8xf32>
    %c0_16 = arith.constant 0 : index
    %c0_17 = arith.constant 0 : index
    %23 = vector.load %arg8[%c0_16, %c0_17] : memref<1x8xf32, #tpu.memory_space<vmem>>, vector<1x8xf32>
    tpu.vector_store %arg8[%c0_16, %c0_17], %22 {strides = array<i32>} : memref<1x8xf32, #tpu.memory_space<vmem>>, vector<1x8xf32>,
    return
  }
  func.func @transform_0(%arg0: i32) -> (i32, i32) {
    %c0_i32 = arith.constant 0 : i32
    %c0_i32_0 = arith.constant 0 : i32
    return %arg0, %c0_i32 : i32, i32
  }
  func.func @transform_1(%arg0: i32) -> (i32, i32) {
    %c0_i32 = arith.constant 0 : i32
    %c0_i32_0 = arith.constant 0 : i32
    %c0_i32_1 = arith.constant 0 : i32
    return %c0_i32, %c0_i32_0 : i32, i32
  }
  func.func @transform_2(%arg0: i32) -> (i32, i32) {
    %c0_i32 = arith.constant 0 : i32
    %c0_i32_0 = arith.constant 0 : i32
    %c0_i32_1 = arith.constant 0 : i32
    return %c0_i32, %c0_i32_0 : i32, i32
  }
  func.func @transform_3(%arg0: i32) -> (i32, i32) {
    %c0_i32 = arith.constant 0 : i32
    %c0_i32_0 = arith.constant 0 : i32
    %c0_i32_1 = arith.constant 0 : i32
    return %c0_i32, %c0_i32_0 : i32, i32
  }
  func.func @transform_4(%arg0: i32) -> (i32, i32) {
    %c0_i32 = arith.constant 0 : i32
    %c0_i32_0 = arith.constant 0 : i32
    %c0_i32_1 = arith.constant 0 : i32
    return %c0_i32, %c0_i32_0 : i32, i32
  }
  func.func @transform_5(%arg0: i32) -> (i32, i32) {
    %c0_i32 = arith.constant 0 : i32
    %c0_i32_0 = arith.constant 0 : i32
    %c0_i32_1 = arith.constant 0 : i32
    return %c0_i32, %c0_i32_0 : i32, i32
  }
  func.func @transform_6(%arg0: i32) -> i32 {
    %c0_i32 = arith.constant 0 : i32
    %c0_i32_0 = arith.constant 0 : i32
    return %c0_i32 : i32
  }
  func.func @transform_7(%arg0: i32) -> (i32, i32) {
    %c0_i32 = arith.constant 0 : i32
    %c0_i32_0 = arith.constant 0 : i32
    return %c0_i32, %arg0 : i32, i32
  }
}

</mosaic_0001>

<bundles_post_ra>
// kernel: tpu_custom_call.1
= control target key start
LH: loop header
LB: loop body
LE: loop exit
PB: predicated region body
PF: predicated region fallthrough
CT: control target
= control target key end

     0   :  { %v315_v3 = vmov 0.0|0.0   ;;  %vm316_vm0 = vmmov 0   ;;  %v317_v6 = vmov 0.0   ;;  %s407_s0 = inlined_call_operand.vmem [shape: f32[8,32], index: 0, kind: input, shape index: {}]   ;;  %s408_s1 = inlined_call_operand.vmem [shape: f32[32,20], index: 1, kind: input, shape index: {}]   ;;  %s409_s2 = inlined_call_operand.vmem [shape: f32[1,20], index: 2, kind: input, shape index: {}]   ;;  %s410_s3 = inlined_call_operand.vmem [shape: f32[20,10], index: 3, kind: input, shape index: {}]   ;;  %s411_s4 = inlined_call_operand.vmem [shape: f32[1,10], index: 4, kind: input, shape index: {}]   ;;  %s412_s5 = inlined_call_operand.vmem [shape: f32[1,10], index: 5, kind: input, shape index: {}]   ;;  %s413_s6 = inlined_call_operand.<no memory space> [shape: f32[1], index: 6, kind: input, shape index: {}]   ;;  %s414_s7 = inlined_call_operand.hbm [shape: f32[1,8], index: 7, kind: output, shape index: {}]  }
   0x1   :  { %v29_v0 = vld [vmem:[%s408_s1] sm:$0xff]  ;;  %v30_v1 = vld [vmem:[%s408_s1 + $0x8] sm:$0xff]  ;;  %v31_v2 = vld [vmem:[%s408_s1 + $0x10] sm:$0xff]  ;;  %278 = vmatprep.subr.bf16.mxu0 %v315_v3  ;;  %266 = vmatprep.mubr.msk.f32.mxu0 %vm316_vm0, %v317_v6 }
   0x2   :  { %v279_v4 = vpack.c.bf16 %v30_v1, %v29_v0  ;;  %v32_v5 = vld [vmem:[%s408_s1 + $0x18] sm:$0xff]  ;;  %284 = vmatprep.subr.bf16.mxu1 %v315_v3  ;;  %275 = vmatprep.mubr.msk.f32.mxu1 %vm316_vm0, %v317_v6 }
   0x3   :  { %13 = vsyncpa [#allocation4], 0  ;;  %v282_v7 = vpack.c.bf16 %v32_v5, %v31_v2  ;;  %v28_v8 = vld [vmem:[%s407_s0] sm:$0xff]  ;;  %vm40_vm1 = vcmask 261120   ;;  %v116_v10 = vld [vmem:[%s410_s3 + $0x8] sm:$0xff]  ;;  %vm129_vm2 = vcmask 1043456   ;;  %v220_v26 = vlaneseq }
   0x4   :  { %280 = vmatpush3.bf16.msra.mxu0 %v279_v4  ;;  %v115_v9 = vld [vmem:[%s410_s3] sm:$0xff]  ;;  %v117_v12 = vld [vmem:[%s410_s3 + $0x10] sm:$0xf]  ;;  %vm125_vm3 = vcmask 162816   ;;  %vm212_vm4 = vcmask 80896   ;;  %v217_v29 = vstv %s413_s6  ;;  %vm227_vm5 = vcmask 57344  }
   0x5   :  { %281 = vmatprep.subr.bf16.mxu0 %v315_v3  ;;  %v285_v11 = vpack.c.bf16 %v116_v10, %v115_v9  ;;  %v243_v13 = vld [vmem:[%s409_s2] ss:$0 sm:$0xff]  ;;  %v221_v27 = vand.u32 127, %v220_v26  ;;  %v223_v28 = vshrl.u32 %v220_v26, 7 }
   0x6   :  { %v245_v18 = vld [vmem:[%s411_s4] ss:$0 sm:$0xff]  ;;  %s318_s4 = smov [#allocation3]  }
   0x7   :  { %286 = vmatpush3.bf16.msra.mxu1 %v285_v11  ;;  %v248_v22 = vld [vmem:[%s412_s5] ss:$0 sm:$0xff]  ;;  %v224_v30 = vsub.s32 %v221_v27, %v223_v28  ;;  %s235_s21 = sshll.u32 %s318_s4, 4  ;;  %s236_s21 = int_to_ptr.vmem [resolvable:$true] %s235_s21 }
   0x8   :  { %283 = vmatpush3.bf16.msra.mxu0 %v282_v7  ;;  %273 = vmatprep.subr.mxu1 %v317_v6  ;;  %s291_s5 = scalar_lea.vmem %s236_s21, 16  ;;  %s295_s22 = scalar_lea.vmem %s236_s21, 32 }
   0x9   :  { %p292_p0 = scmp.ne.s32.totalorder %s236_s21, %s291_s5  ;;  %p296_p1 = scmp.lt.s32.totalorder %s236_s21, %s236_s21 }
   0xa   :  { %p297_p2 = scmp.lt.s32.totalorder %s295_s22, %s291_s5 }
   0xb   :  { %267 = vmatmul.mubr.msk.f32.vlgmr.msra.gmra.mrb[0].mxu0 %vm40_vm1, %v28_v8  ;;  %274 = vmatpush3.msk.msra.mxu1 %vm129_vm2, %v117_v12 }
   0xc   :  { %p298_p3 = por %p297_p2, %p296_p1 }
   0xe   :  { %p299_p4 = pnand %p298_p3, %p292_p0 }
  0xde   :  { %v110_v14 = vpop.f32.mrb[0].mxu0 }
  0xdf   :  { %v111_v15 = vadd.f32 %v243_v13, %v110_v14  ;;  %v268_v16 = vpop.f32.mrb[1].mxu0 }
  0xe1   :  { %v114_v17 = vmax.f32 %v111_v15, 0.0 }
  0xe3   :  { %276 = vmatmul.mubr.msk.f32.vlgmr.msra.gmra.mrb[0].mxu1 %vm125_vm3, %v114_v17 }
 0x1b6   :  { %v199_v19 = vpop.f32.mrb[0].mxu1 }
 0x1b7   :  { %v200_v20 = vadd.f32 %v245_v18, %v199_v19  ;;  %v277_v21 = vpop.f32.mrb[1].mxu1 }
 0x1b9   :  { %v203_v23 = vmax.f32 %v200_v20, 0.0 }
 0x1bb   :  { %v211_v24 = vmul.f32 %v248_v22, %v203_v23 }
 0x1bd   :  { %v213_v25 = vsel %vm212_vm4, %v211_v24, 0.0 }
 0x1be   :  { %214 = vadd.xlane.f32.xlu0 %v213_v25 }
 0x24b   :  { %v215_v31 = vpop.xlane.xlu0 %214 }
 0x24c   :  { %v218_v32 = vadd.f32 %v217_v29, %v215_v31 }
 0x24e   :  { %v225_v33 = vrot.slane %v218_v32, %v224_v30 }
 0x250   :  { %228 = vst.msk [vmem:[#allocation3] sm:$0x1] %vm227_vm5, %v225_v33 }
 0x251   :  { %302 = shalt.err (!%p299_p4)
}
 0x252   :  { %s303_s6 = scalar_lea.hbm %s414_s7, 16 }
 0x253   :  { %p304_p5 = scmp.ne.s32.totalorder %s414_s7, %s303_s6  ;;  %p307_p6 = scmp.lt.u32.totalorder %s303_s6, %s414_s7 }
 0x255   :  { %p309_p7 = pnand %p307_p6, %p304_p5 }
 0x257   :  { %312 = shalt.err (!%p309_p7)
}
 0x258   :  { %238 = dma.vmem_to_hbm [thread:$0]  %s236_s21, 16, %s414_s7, [#allocation4]  }
 0x259   :  { %313 = dma.done.wait [#allocation4], 16  }
 0x25a   :  { %314 = vsyncadd [#allocation4], 4294967280 }
 0x25b   :  { %242 = vsyncpa [#allocation4], 1 }

</bundles_post_ra>
